<compile_context>
chip_gen: v6e
topology: v6e:2x2x1
jax: 0.10.0
libtpu: 0.0.40
codegen_flags: <defaults>
</compile_context>

<pallas_src>
import functools

import jax
import jax.numpy as jnp
from jax.experimental import pallas as pl
from jax.experimental.pallas import tpu as pltpu


def _causal_conv1d_kernel(x_ref, w_ref, b_ref, o_ref, halo_ref, *,
                          kernel_size, l_tile):
    # x_ref   : (1, C_in, LT)        current time tile of the raw (unpadded) input
    # w_ref   : (C_out, K*C_in)      W2[o, k*C_in + c] = weight[o, c, k]
    # b_ref   : (C_out, 1)           bias (f32)
    # o_ref   : (1, C_out, LT)       output tile
    # halo_ref: (C_in, max(K-1, 1))  VMEM scratch: last K-1 columns of previous tile
    K = kernel_size
    l = pl.program_id(1)

    x = x_ref[0]                                  # (C_in, LT)

    if K > 1:
        # First time tile of each batch row: causal left padding is zeros.
        @pl.when(l == 0)
        def _():
            halo_ref[...] = jnp.zeros_like(halo_ref)

        # Window with left halo: xw[:, m] = x_padded_left[:, tile_start + m]
        xw = jnp.concatenate([halo_ref[...], x], axis=-1)   # (C_in, LT + K - 1)
    else:
        xw = x

    # im2col slab: slab[k*C_in + c, t] = x_padded_left[c, tile_start + t + k]
    taps = [xw[:, k:k + l_tile] for k in range(K)]
    slab = taps[0] if K == 1 else jnp.concatenate(taps, axis=0)  # (K*C_in, LT)

    # Single lane-dense MXU matmul over the full (C_in * K) contraction.
    acc = jnp.dot(w_ref[...], slab, preferred_element_type=jnp.float32)
    acc = acc + b_ref[...]                        # f32 bias add, broadcast over L
    o_ref[0] = acc.astype(o_ref.dtype)

    if K > 1:
        # Carry the last K-1 input columns of this tile for the next time tile.
        halo_ref[...] = x[:, l_tile - (K - 1):]


def causal_conv1d(x, weight, bias, *, l_tile=512):
    """Causal 1D conv. x: (B, C_in, L), weight: (C_out, C_in, K), bias: (C_out,)."""
    B, C_in, L = x.shape
    C_out, C_in_w, K = weight.shape
    assert C_in == C_in_w
    assert K >= 1

    # Lane-dense time tile: multiple of 128, no larger than the (rounded) sequence.
    lt = max(128, min(l_tile, pl.cdiv(L, 128) * 128))
    assert lt % 128 == 0
    assert K - 1 <= lt, "kernel taps must fit inside one time tile"
    Lp = pl.cdiv(L, lt) * lt
    nL = Lp // lt

    # Right-pad L to a multiple of the tile (zeros never affect causal outputs
    # at t < L); this is the only wrapper-side copy and only happens if needed.
    x_in = x if Lp == L else jnp.pad(x, ((0, 0), (0, 0), (0, Lp - L)))

    # Fold all K taps into one matmul: W2[o, k*C_in + c] = weight[o, c, k].
    w2 = jnp.transpose(weight, (0, 2, 1)).reshape(C_out, K * C_in)
    bias2d = bias.reshape(C_out, 1).astype(jnp.float32)

    kernel = functools.partial(_causal_conv1d_kernel, kernel_size=K, l_tile=lt)

    out = pl.pallas_call(
        kernel,
        out_shape=jax.ShapeDtypeStruct((B, C_out, Lp), x.dtype),
        grid_spec=pltpu.PrefetchScalarGridSpec(
            num_scalar_prefetch=0,
            grid=(B, nL),
            in_specs=[
                pl.BlockSpec((1, C_in, lt), lambda b, l: (b, 0, l)),
                pl.BlockSpec((C_out, K * C_in), lambda b, l: (0, 0)),
                pl.BlockSpec((C_out, 1), lambda b, l: (0, 0)),
            ],
            out_specs=pl.BlockSpec((1, C_out, lt), lambda b, l: (b, 0, l)),
            scratch_shapes=[pltpu.VMEM((C_in, max(K - 1, 1)), x.dtype)],
        ),
        compiler_params=pltpu.CompilerParams(
            # B parallel (v7x megacore); L must be arbitrary (sequential halo carry).
            dimension_semantics=("parallel", "arbitrary"),
        ),
    )(x_in, w2, bias2d)

    return out if Lp == L else out[:, :, :L]


def causal_conv1d_ref(x, weight, bias):
    """Pure-JAX reference matching PyTorch CausalConv1d.forward."""
    K = weight.shape[-1]
    pad = K - 1
    x_pad = jnp.pad(x, ((0, 0), (0, 0), (pad, 0)))
    y = jax.lax.conv_general_dilated(
        x_pad, weight,
        window_strides=(1,),
        padding="VALID",
        dimension_numbers=("NCH", "OIH", "NCH"),
    )
    return y + bias.reshape(1, -1, 1)


if __name__ == "__main__":
    # Small shapes consistent with the module's forward (NCL input).
    B, C_in, C_out, L, K = 2, 4, 8, 16, 3

    key = jax.random.PRNGKey(0)
    kx, kw, kb = jax.random.split(key, 3)

    x = jax.random.normal(kx, (B, C_in, L), dtype=jnp.float32)

    # Deterministic parameter init mimicking nn.Conv1d's uniform(-bound, bound).
    bound = 1.0 / (C_in * K) ** 0.5
    weight = jax.random.uniform(kw, (C_out, C_in, K), jnp.float32, -bound, bound)
    bias = jax.random.uniform(kb, (C_out,), jnp.float32, -bound, bound)

    y = causal_conv1d(x, weight, bias)
    y = jax.block_until_ready(y)

    y_ref = causal_conv1d_ref(x, weight, bias)
    assert y.shape == (B, C_out, L)
    assert jnp.allclose(y, y_ref, atol=1e-5, rtol=1e-5), "mismatch vs reference"

    print("KERNEL_OK")
</pallas_src>

<mosaic_0001>
module attributes {stable_mosaic.version = 11 : i64} {
  func.func @_causal_conv1d_kernel(%arg0: i32, %arg1: i32, %arg2: memref<1x4x128xf32, #tpu.memory_space<vmem>>, %arg3: memref<8x12xf32, #tpu.memory_space<vmem>>, %arg4: memref<8x1xf32, #tpu.memory_space<vmem>>, %arg5: memref<1x8x128xf32, #tpu.memory_space<vmem>>, %arg6: memref<4x2xf32, #tpu.memory_space<vmem>>) attributes {dimension_semantics = [#tpu.dimension_semantics<parallel>, #tpu.dimension_semantics<arbitrary>], iteration_bounds = array<i64: 2, 1>, scalar_prefetch = 0 : i64, scratch_operands = 1 : i64, tpu.core_type = #tpu.core_type<tc>, window_params = [{transform_indices = @transform_0, window_bounds = array<i64: 1, 4, 128>}, {pipeline_mode = #tpu.pipeline_mode<synchronous>, transform_indices = @transform_1, window_bounds = array<i64: 8, 12>}, {pipeline_mode = #tpu.pipeline_mode<synchronous>, transform_indices = @transform_2, window_bounds = array<i64: 8, 1>}, {transform_indices = @transform_3, window_bounds = array<i64: 1, 8, 128>}]} {
    %c0 = arith.constant 0 : index
    %c0_0 = arith.constant 0 : index
    %c0_1 = arith.constant 0 : index
    %0 = vector.load %arg2[%c0, %c0_0, %c0_1] : memref<1x4x128xf32, #tpu.memory_space<vmem>>, vector<1x4x128xf32>
    %1 = vector.shape_cast %0 : vector<1x4x128xf32> to vector<4x128xf32>
    %c0_i32 = arith.constant 0 : i32
    %2 = arith.cmpi eq, %arg1, %c0_i32 : i32
    %3 = arith.extui %2 : i1 to i32
    %c0_i32_2 = arith.constant 0 : i32
    %4 = arith.cmpi ne, %3, %c0_i32_2 : i32
    scf.if %4 {
      %cst_14 = arith.constant 0.000000e+00 : f32
      %21 = vector.broadcast %cst_14 : f32 to vector<4x2xf32>
      %c0_15 = arith.constant 0 : index
      %c0_16 = arith.constant 0 : index
      %22 = vector.load %arg6[%c0_15, %c0_16] : memref<4x2xf32, #tpu.memory_space<vmem>>, vector<4x2xf32>
      tpu.vector_store %arg6[%c0_15, %c0_16], %21 {strides = array<i32>} : memref<4x2xf32, #tpu.memory_space<vmem>>, vector<4x2xf32>,
    } else {
    }
    %c0_3 = arith.constant 0 : index
    %c0_4 = arith.constant 0 : index
    %5 = vector.load %arg6[%c0_3, %c0_4] : memref<4x2xf32, #tpu.memory_space<vmem>>, vector<4x2xf32>
    %6 = tpu.concatenate %5, %1 in 1 : vector<4x2xf32>, vector<4x128xf32> -> vector<4x130xf32>
    %7 = vector.extract_strided_slice %6 {offsets = [0, 0], sizes = [4, 128], strides = [1, 1]} : vector<4x130xf32> to vector<4x128xf32>
    %8 = vector.extract_strided_slice %6 {offsets = [0, 1], sizes = [4, 128], strides = [1, 1]} : vector<4x130xf32> to vector<4x128xf32>
    %9 = vector.extract_strided_slice %6 {offsets = [0, 2], sizes = [4, 128], strides = [1, 1]} : vector<4x130xf32> to vector<4x128xf32>
    %10 = tpu.concatenate %7, %8, %9 in 0 : vector<4x128xf32>, vector<4x128xf32>, vector<4x128xf32> -> vector<12x128xf32>
    %c0_5 = arith.constant 0 : index
    %c0_6 = arith.constant 0 : index
    %11 = vector.load %arg3[%c0_5, %c0_6] : memref<8x12xf32, #tpu.memory_space<vmem>>, vector<8x12xf32>
    %cst = arith.constant dense<0.000000e+00> : vector<8x128xf32>
    %12 = tpu.matmul %11, %10, %cst {dimension_numbers = #tpu.dot_dimension_numbers<[1], [0], [0], [1], [0, 0, 1, 1], [], []>} : vector<8x12xf32>, vector<12x128xf32>, vector<8x128xf32> -> vector<8x128xf32>
    %c0_7 = arith.constant 0 : index
    %c0_8 = arith.constant 0 : index
    %13 = vector.load %arg4[%c0_7, %c0_8] : memref<8x1xf32, #tpu.memory_space<vmem>>, vector<8x1xf32>
    %14 = vector.broadcast %13 : vector<8x1xf32> to vector<8x128xf32>
    %15 = arith.addf %12, %14 : vector<8x128xf32>
    %c0_9 = arith.constant 0 : index
    %c0_10 = arith.constant 0 : index
    %c0_11 = arith.constant 0 : index
    %16 = vector.load %arg5[%c0_9, %c0_10, %c0_11] : memref<1x8x128xf32, #tpu.memory_space<vmem>>, vector<1x8x128xf32>
    %17 = vector.shape_cast %16 : vector<1x8x128xf32> to vector<8x128xf32>
    %18 = vector.shape_cast %15 : vector<8x128xf32> to vector<1x8x128xf32>
    tpu.vector_store %arg5[%c0_9, %c0_10, %c0_11], %18 {strides = array<i32>} : memref<1x8x128xf32, #tpu.memory_space<vmem>>, vector<1x8x128xf32>,
    %19 = vector.extract_strided_slice %1 {offsets = [0, 126], sizes = [4, 2], strides = [1, 1]} : vector<4x128xf32> to vector<4x2xf32>
    %c0_12 = arith.constant 0 : index
    %c0_13 = arith.constant 0 : index
    %20 = vector.load %arg6[%c0_12, %c0_13] : memref<4x2xf32, #tpu.memory_space<vmem>>, vector<4x2xf32>
    tpu.vector_store %arg6[%c0_12, %c0_13], %19 {strides = array<i32>} : memref<4x2xf32, #tpu.memory_space<vmem>>, vector<4x2xf32>,
    return
  }
  func.func @transform_0(%arg0: i32, %arg1: i32) -> (i32, i32, i32) {
    %c0_i32 = arith.constant 0 : i32
    %c0_i32_0 = arith.constant 0 : i32
    return %arg0, %c0_i32, %arg1 : i32, i32, i32
  }
  func.func @transform_1(%arg0: i32, %arg1: i32) -> (i32, i32) {
    %c0_i32 = arith.constant 0 : i32
    %c0_i32_0 = arith.constant 0 : i32
    %c0_i32_1 = arith.constant 0 : i32
    return %c0_i32, %c0_i32_0 : i32, i32
  }
  func.func @transform_2(%arg0: i32, %arg1: i32) -> (i32, i32) {
    %c0_i32 = arith.constant 0 : i32
    %c0_i32_0 = arith.constant 0 : i32
    %c0_i32_1 = arith.constant 0 : i32
    return %c0_i32, %c0_i32_0 : i32, i32
  }
  func.func @transform_3(%arg0: i32, %arg1: i32) -> (i32, i32, i32) {
    %c0_i32 = arith.constant 0 : i32
    %c0_i32_0 = arith.constant 0 : i32
    return %arg0, %c0_i32, %arg1 : i32, i32, i32
  }
}

</mosaic_0001>

<bundles_post_ra>
// kernel: tpu_custom_call.1
= control target key start
LH: loop header
LB: loop body
LE: loop exit
PB: predicated region body
PF: predicated region fallthrough
CT: control target
= control target key end

     0   :  { %8 = vsyncpa [#allocation4], 0  ;;  %s786_s0 = inlined_call_operand.vmem [shape: f32[2,4,128], index: 0, kind: input, shape index: {}]   ;;  %s787_s1 = inlined_call_operand.hbm [shape: f32[8,12], index: 1, kind: input, shape index: {}]   ;;  %s788_s2 = inlined_call_operand.vmem [shape: f32[8,1], index: 2, kind: input, shape index: {}]   ;;  %s789_s3 = inlined_call_operand.hbm [shape: f32[2,8,128], index: 3, kind: output, shape index: {}]  }
   0x1   :  { %9 = vsyncpa [#allocation5], 0 }
   0x2   :  { %11 = vsyncpa [#allocation5 + $0x1], 0  ;;  %s655_s12 = smov 0   ;;  %s657_s13 = smov 0  }
   0x3   :  { %s659_s14 = smov 0   ;;  %s661_s15 = smov 0  }
   0x4   :  { %s663_s16 = smov 0   ;;  %s665_s17 = smov 0  }
   0x5 LB: > { %s420_s18 = sadd.s32 4294967295, %s625_s17   ;;  %s421_s19 = sadd.s32 4294967294, %s625_s17   ;;  %s625_s17 = sphi %s665_s17, %s17_s17   ;;  %s621_s16 = sphi %s663_s16, %s798_s16   ;;  %s617_s15 = sphi %s661_s15, %s797_s15   ;;  %s613_s14 = sphi %s659_s14, %s796_s14   ;;  %s609_s13 = sphi %s657_s13, %s795_s13   ;;  %s605_s12 = sphi %s655_s12, %s794_s12  }
   0x6   : > { %s29_s20 = sadd.s32 1, %s621_s16  ;;  %s108_s21 = sadd.s32 1, %s613_s14 }
   0x7   : > { %p31_p0 = scmp.ge.s32.totalorder %s29_s20, 2  ;;  %p118_p1 = scmp.ne.s32.totalorder %s613_s14, %s609_s13 }
   0x8   : > { %p119_p2 = scmp.eq.s32.totalorder %s420_s18, 1  ;;  %p124_p3 = scmp.ne.s32.totalorder %s609_s13, %s605_s12 }
   0x9   : > { %s800_s20 = smov (%p31_p0, %s29_s20), 0  ;;  %p125_p5 = scmp.eq.s32.totalorder %s421_s19, 1 }
   0xa   : > { %p695_p4 = por %p119_p2, %p118_p1  ;;  %s103_s23 = ssub.s32 %s621_s16, %s800_s20 }
   0xb   : > { %p422_p6 = scmp.ge.s32.totalorder %s625_s17, 1  ;;  %p106_p7 = scmp.eq.s32.totalorder %s103_s23, 0 }
   0xc   : > { %p702_p8 = por %p125_p5, %p124_p3  ;;  %p132_p9 = scmp.lt.s32.totalorder %s625_s17, 3 }
   0xd   : > { %s708_s25 = scalar_select %p106_p7, %s613_s14, %s108_s21  }
   0xe   : > { %p710_p10 = pnand %p422_p6, %p132_p9  ;;  %p714_p11 = scmp.eq.s32.totalorder %s420_s18, 0 }
   0xf   : > { %s627_s28 = smov [#allocation3]  }
  0x10   : > { %p451_p12 = pneg %p710_p10  ;;  %s145_s29 = sshll.u32 %s627_s28, 4  ;;  %s146_s29 = int_to_ptr.vmem [resolvable:$true] %s145_s29 }
  0x11   : > { %s530_s30 = scalar_lea.vmem %s146_s29, 128  ;;  %p538_p5 = scmp.lt.s32.totalorder %s146_s29, %s146_s29 }
  0x12   : > { %p452_p13 = pnand %p714_p11, %p451_p12  ;;  %p531_p1 = scmp.ne.s32.totalorder %s146_s29, %s530_s30 }
  0x13   : > { %p539_p6 = scmp.lt.s32.totalorder %s530_s30, %s530_s30 }
  0x14   : > { %p521_p0 = pneg %p452_p13 }
  0x15   : > { %p540_p7 = por %p539_p6, %p538_p5 }
  0x16   : > { %p533_p2 = pnand %p531_p1, %p521_p0 }
  0x18   : > { %p534_p3 = pneg %p533_p2 }
  0x1a   : > { %p541_p9 = pnand %p540_p7, %p534_p3 }
  0x1c   : > { %544 = shalt.err (!%p541_p9)
}
  0x1d   : > { %454 = dma.hbm_to_vmem [thread:$0]  (!%p452_p13), %s787_s1, 128, %s146_s29, [#allocation4]  }
  0x1e   : > { %171 = sbr.rel (%p710_p10) target bundleno = 489 (0x1e9), region = 32 }
  0x23   : > { %596 = dma.done.wait (%p714_p11), [#allocation4], 128  }
  0x24   : > { %598 = vsyncadd (%p714_p11), [#allocation4], 4294967168  ;;  %vm209_vm0 = vcmask 11264   ;;  %p197_p12 = scmp.lt.s32.totalorder %s617_s15, 1  ;;  %v628_v0 = vmov 0.0   ;;  %s629_s11 = smov 2  }
  0x25   : > { %210 = vst.msk [vmem:[#allocation2] sm:$0xf] %vm209_vm0, %v628_v0  ;;  %438 = vmatprep.subr.mxu0 %v628_v0  ;;  %vm630_vm1 = vmmov 0   ;;  %v631_v2 = vmov 0   ;;  %vm216_vm2 = vcmask 15360   ;;  %s632_s18 = smov 126  }
  0x26   : > { %s198_s6 = scalar_select %p197_p12, %s617_s15, 1  ;;  %442 = vmatprep.mubr.msk.f32.mxu0 %vm630_vm1, %v628_v0  ;;  %517 = vset.pattern.permute.xlu1 %v631_v2  ;;  %v237_v8 = vld [vmem:[%s788_s2] sm:$0xff]  ;;  %vm232_vm3 = vcmask 1031168   ;;  %vm234_vm4 = vcmask 1043456   ;;  %vm225_vm5 = vcmask 1039360   ;;  %vm243_vm6 = vcmask 97280  }
  0x27   : > { %518 = vset.pattern.permute.xlu0 %v631_v2  ;;  %s633_s19 = smov 127   ;;  %v236_v15 = vld [vmem:[#allocation3] sm:$0xff]  ;;  %s194_s26 = sand.u32 1, %s609_s13  }
  0x28   : > { %s428_s7 = sshll.u32 %s198_s6, 2  ;;  %s427_s27 = sshll.u32 %s194_s26, 3 }
  0x29   : > { %s203_s10 = scalar_lea.vmem %s786_s0, %s428_s7  ;;  %s432_s28 = sshll.u32 %s617_s15, 7 }
  0x2a   : > { %v204_v1 = vld [vmem:[%s203_s10] sm:$0xf]  ;;  %s196_s29 = scalar_lea.vmem [#allocation6], %s427_s27  ;;  %s746_s6 = scalar_lea.hbm %s789_s3, %s432_s28 }
  0x2b   : > { %213 = vrot.lane.b32.xlu0 %v204_v1, %s629_s11  ;;  %s337_s30 = sshll.u32 %s196_s29, 4  ;;  %s323_s7 = scalar_lea.sflag [#allocation5], %s194_s26  ;;  %s338_s30 = int_to_ptr.vmem [resolvable:$true] %s337_s30 }
  0x2c   : > { %v211_v3 = vld [vmem:[#allocation2] sm:$0xf]  ;;  %s545_s8 = scalar_lea.vmem %s338_s30, 128  ;;  %s634_s9 = smov [#allocation6]  }
  0x2d   : > { %p546_p10 = scmp.ne.s32.totalorder %s338_s30, %s545_s8  ;;  %s549_s15 = sshll.u32 %s634_s9, 4  ;;  %s550_s15 = int_to_ptr.vmem [resolvable:$false] %s549_s15 }
  0x2e   : > { %s551_s10 = scalar_lea.vmem %s550_s15, 256  ;;  %p552_p0 = scmp.lt.s32.totalorder %s338_s30, %s550_s15 }
  0x2f   : > { %p547_p11 = pnand %p546_p10, %p695_p4  ;;  %p553_p1 = scmp.lt.s32.totalorder %s551_s10, %s545_s8 }
  0x31   : > { %p548_p13 = pneg %p547_p11  ;;  %p554_p2 = por %p553_p1, %p552_p0 }
  0x33   : > { %p555_p3 = pnand %p554_p2, %p548_p13 }
  0x9d   : > { %v214_v4 = vpop.permute.xlu0 %213 }
  0x9e   : > { %230 = vrot.lane.b32.xlu1 %v214_v4, %s632_s18  ;;  %v217_v5 = vsel %vm216_vm2, %v211_v3, %v214_v4  ;;  %321 = vst.msk [vmem:[#allocation2] sm:$0xf] %vm209_vm0, %v214_v4  ;;  %v220_v7 = vrot.slane %v214_v4, 4 }
  0x9f   : > { %228 = vrot.lane.b32.xlu0 %v217_v5, %s632_s18  ;;  %v219_v6 = vrot.slane %v217_v5, 4 }
  0xa2   : > { %221 = vrot.lane.b32.xlu1 %v219_v6, %s633_s19 }
  0xa3   : > { %223 = vrot.lane.b32.xlu0 %v220_v7, %s633_s19 }
  0xa6   : > { %240 = vperm.xlu1 %517, %v237_v8  }
 0x110   : > { %v231_v9 = vpop.permute.xlu1 %230 }
 0x111   : > { %v229_v10 = vpop.permute.xlu0 %228 }
 0x112   : > { %v233_v11 = vsel %vm232_vm3, %v229_v10, %v231_v9 }
 0x113   : > { %439 = vmatpush3.msk.msra.mxu0 %vm234_vm4, %v233_v11 }
 0x114   : > { %v222_v12 = vpop.permute.xlu1 %221  ;;  %440 = vmatprep.subr.mxu0 %v628_v0 }
 0x115   : > { %v224_v13 = vpop.permute.xlu0 %223 }
 0x116   : > { %v226_v14 = vsel %vm225_vm5, %v222_v12, %v224_v13 }
 0x117   : > { %v235_v16 = vsel %vm234_vm4, %v217_v5, %v226_v14 }
 0x118   : > { %441 = vmatpush3.msra.mxu0 %v235_v16 }
 0x119   : > { %443 = vmatmul.mubr.msk.f32.vlgmr.msra.gmra.mxu0 %vm243_vm6, %v236_v15 }
 0x121   : > { %v241_v17 = vpop.permute.xlu1 %240 }
 0x1d9   : > { %v315_v18 = vpop.f32.mrf.mxu0 }
 0x1da   : > { %v316_v19 = vadd.f32 %v315_v18, %v241_v17 }
 0x1db   : > { %v444_v20 = vpop.f32.mrf.mxu0 }
 0x1dc   : > { %319 = vst [vmem:[%s196_s29] sm:$0xff] %v316_v19 }
 0x1dd   : > { %558 = shalt.err (!%p555_p3)
}
 0x1de   : > { %s559_s11 = scalar_lea.hbm %s746_s6, 128  ;;  %s563_s21 = scalar_lea.hbm %s789_s3, 256 }
 0x1df   : > { %p560_p5 = scmp.ne.s32.totalorder %s746_s6, %s559_s11  ;;  %p564_p9 = scmp.lt.s32.totalorder %s746_s6, %s789_s3 }
 0x1e0   : > { %p565_p12 = scmp.lt.s32.totalorder %s563_s21, %s559_s11 }
 0x1e1   : > { %p561_p6 = pnand %p560_p5, %p695_p4 }
 0x1e2   : > { %p566_p10 = por %p565_p12, %p564_p9 }
 0x1e3   : > { %p562_p7 = pneg %p561_p6 }
 0x1e5   : > { %p567_p11 = pnand %p566_p10, %p562_p7 }
 0x1e7   : > { %570 = shalt.err (!%p567_p11)
}
 0x1e8   : > { %449 = dma.vmem_to_hbm [thread:$0]  (%p695_p4), %s338_s30, 128, %s746_s6, %s323_s7  }
 0x1e9 PF: > { %p461_p13 = scmp.ge.s32.totalorder %s625_s17, 2  ;;  %s349_s27 = sand.u32 1, %s605_s12  }
 0x1ea   : > { %s350_s28 = scalar_lea.sflag [#allocation5], %s349_s27 }
 0x1eb   : > { %p456_p0 = pnand %p461_p13, %p702_p8 }
 0x1ed   : > { %p457_p1 = pneg %p456_p0 }
 0x1ef   : > { %600 = dma.done.wait (%p457_p1), %s350_s28, 128  }
 0x1f0   : > { %602 = vsyncadd (%p457_p1), %s350_s28, 4294967168  ;;  %s17_s17 = sadd.s32 1, %s625_s17   ;;  %s794_s12 = smov %s609_s13 }
 0x1f1   : > { %p14_p2 = scmp.ge.s32.totalorder %s17_s17, 4   ;;  %s795_s13 = smov %s613_s14 }
 0x1f2   : > { %s796_s14 = smov %s708_s25  ;;  %s797_s15 = smov %s621_s16 }
 0x1f3   : > { %s798_s16 = smov %s800_s20  ;;  %16 = sbr.rel (!%p14_p2) target bundleno = 5 (0x5), region = 76 }
 0x1f8   :  { %355 = vsyncpa [#allocation4], 1 }
 0x1f9   :  { %357 = vsyncpa [#allocation4 + $0x1], 1 }
 0x1fa   :  { %358 = vsyncpa [#allocation5], 1 }
 0x1fb   :  { %360 = vsyncpa [#allocation5 + $0x1], 1 }

</bundles_post_ra>
